<compile_context>
chip_gen: v7x
topology: tpu7x:2x2x1
jax: 0.10.0
libtpu: 0.0.40
codegen_flags: <defaults>
</compile_context>

<pallas_src>
import functools

import jax
import jax.numpy as jnp
from jax.experimental import pallas as pl
from jax.experimental.pallas import tpu as pltpu


# ---------------------------------------------------------------------------
# Fused Pallas kernel: one grid step == one batch element
# ---------------------------------------------------------------------------
def _fused_cross_attn_kernel(xq_ref, xkv_ref, wq_ref, bq_ref, wkv_ref, bkv_ref,
                             wo_ref, bo_ref, o_ref, *, num_heads):
    """Channel-major (C, L) layout throughout.

    xq_ref : (Cq, Lq)    query-stream pixels for this batch element
    xkv_ref: (Ckv, Lkv)  key/value-stream pixels
    wq_ref : (E, Cq)     composed (in_proj_q . query-linear), 1/sqrt(d) folded in
    bq_ref : (E, 1)
    wkv_ref: (2E, Ckv)   composed k|v projections, stacked along rows
    bkv_ref: (2E, 1)
    wo_ref : (E, E)      MultiheadAttention out_proj weight
    bo_ref : (E, 1)
    o_ref  : (E, Lq)     output, channel-major == NCHW layout
    """
    # Projections: one MXU matmul for q, one for fused k|v. Intermediates in VMEM.
    q_t = (jnp.dot(wq_ref[...], xq_ref[...], preferred_element_type=jnp.float32)
           + bq_ref[...])                                            # (E, Lq), pre-scaled
    kv_t = (jnp.dot(wkv_ref[...], xkv_ref[...], preferred_element_type=jnp.float32)
            + bkv_ref[...])                                          # (2E, Lkv)

    E = q_t.shape[0]
    d = E // num_heads
    k_t = kv_t[:E, :]                                                # (E, Lkv)
    v_t = kv_t[E:, :]                                                # (E, Lkv)

    q = q_t.T                                                        # (Lq, E)

    head_outs = []
    for h in range(num_heads):                                       # static unroll
        lo, hi = h * d, (h + 1) * d
        q_h = q[:, lo:hi]                                            # (Lq, d)
        k_h = k_t[lo:hi, :]                                          # (d, Lkv)
        v_h = v_t[lo:hi, :]                                          # (d, Lkv)

        s = jnp.dot(q_h, k_h, preferred_element_type=jnp.float32)    # (Lq, Lkv)
        m = jnp.max(s, axis=-1, keepdims=True)
        p = jnp.exp(s - m)
        l = jnp.sum(p, axis=-1, keepdims=True)
        p = p * pl.reciprocal(l, approx=True)                        # EUP, not a full divide
        # TODO(synk): attention dropout (p=0.2) is omitted -> eval-mode semantics.

        # o_h^T = v_h @ p^T  -> (d, Lq), stays channel-major
        o_h = jax.lax.dot_general(v_h, p, (((1,), (1,)), ((), ())),
                                  preferred_element_type=jnp.float32)
        head_outs.append(o_h)

    attn_t = jnp.concatenate(head_outs, axis=0)                      # (E, Lq)
    o_ref[...] = (jnp.dot(wo_ref[...], attn_t, preferred_element_type=jnp.float32)
                  + bo_ref[...])                                     # (E, Lq)


# ---------------------------------------------------------------------------
# Forward wrapper: weight composition (exact) + single pallas_call
# ---------------------------------------------------------------------------
def cross_attention_forward(params, x_query, x_key_value, num_heads):
    B, Cq, H, W = x_query.shape
    Bk, Ckv, Hk, Wk = x_key_value.shape
    assert B == Bk, "query / key_value batch mismatch"
    Lq, Lkv = H * W, Hk * Wk
    E = params["out_w"].shape[0]
    assert E % num_heads == 0
    d = E // num_heads
    # Fused in_proj path of nn.MultiheadAttention requires in_channels_kv == out_channels.
    assert Ckv == E, "CrossAttention only runs when in_channels_kv == out_channels"

    # ---- algebraic composition of back-to-back linears (exact, done once) ----
    wq_in = params["in_w"][:E]
    wk_in = params["in_w"][E:2 * E]
    wv_in = params["in_w"][2 * E:]
    bq_in = params["in_b"][:E]
    bk_in = params["in_b"][E:2 * E]
    bv_in = params["in_b"][2 * E:]

    scale = 1.0 / float(d) ** 0.5
    wq_eff = scale * (wq_in @ params["q_w"])                 # (E, Cq)
    bq_eff = scale * (wq_in @ params["q_b"] + bq_in)         # (E,)
    wk_eff = wk_in @ params["kv_w"][:E]                      # (E, Ckv)
    bk_eff = wk_in @ params["kv_b"][:E] + bk_in
    wv_eff = wv_in @ params["kv_w"][E:]                      # (E, Ckv)
    bv_eff = wv_in @ params["kv_b"][E:] + bv_in
    wkv_eff = jnp.concatenate([wk_eff, wv_eff], axis=0)      # (2E, Ckv)
    bkv_eff = jnp.concatenate([bk_eff, bv_eff], axis=0)      # (2E,)

    # NCHW -> (B, C, H*W): free (contiguous) reshape, no transpose.
    xq = x_query.reshape(B, Cq, Lq)
    xkv = x_key_value.reshape(B, Ckv, Lkv)

    kern = functools.partial(_fused_cross_attn_kernel, num_heads=num_heads)
    out = pl.pallas_call(
        kern,
        out_shape=jax.ShapeDtypeStruct((B, E, Lq), jnp.float32),
        grid=(B,),
        in_specs=[
            pl.BlockSpec((None, Cq, Lq), lambda b: (b, 0, 0)),
            pl.BlockSpec((None, Ckv, Lkv), lambda b: (b, 0, 0)),
            pl.BlockSpec((E, Cq), lambda b: (0, 0)),
            pl.BlockSpec((E, 1), lambda b: (0, 0)),
            pl.BlockSpec((2 * E, Ckv), lambda b: (0, 0)),
            pl.BlockSpec((2 * E, 1), lambda b: (0, 0)),
            pl.BlockSpec((E, E), lambda b: (0, 0)),
            pl.BlockSpec((E, 1), lambda b: (0, 0)),
        ],
        out_specs=pl.BlockSpec((None, E, Lq), lambda b: (b, 0, 0)),
        compiler_params=pltpu.CompilerParams(
            dimension_semantics=("parallel",)),
    )(xq, xkv,
      wq_eff, bq_eff.reshape(E, 1),
      wkv_eff, bkv_eff.reshape(2 * E, 1),
      params["out_w"], params["out_b"].reshape(E, 1))

    # (B, E, Lq) -> (B, E, H, W): free reshape (already NCHW layout).
    return out.reshape(B, E, H, W)


# ---------------------------------------------------------------------------
# Pure-JAX reference (uncomposed math, PyTorch layout) for correctness check
# ---------------------------------------------------------------------------
def reference_forward(params, x_query, x_key_value, num_heads):
    B, Cq, H, W = x_query.shape
    Bk, Ckv, Hk, Wk = x_key_value.shape
    Lq, Lkv = H * W, Hk * Wk
    E = params["q_w"].shape[0]
    d = E // num_heads

    q_in = jnp.transpose(x_query.reshape(B, Cq, Lq), (2, 0, 1))
    kv_in = jnp.transpose(x_key_value.reshape(Bk, Ckv, Lkv), (2, 0, 1))

    query = q_in @ params["q_w"].T + params["q_b"]
    key_value = kv_in @ params["kv_w"].T + params["kv_b"]
    key, value = key_value[..., :E], key_value[..., E:]

    wq, wk, wv = params["in_w"][:E], params["in_w"][E:2 * E], params["in_w"][2 * E:]
    bq, bk, bv = params["in_b"][:E], params["in_b"][E:2 * E], params["in_b"][2 * E:]
    qp = query @ wq.T + bq
    kp = key @ wk.T + bk
    vp = value @ wv.T + bv

    qh = qp.reshape(Lq, B, num_heads, d).transpose(1, 2, 0, 3)
    kh = kp.reshape(Lkv, Bk, num_heads, d).transpose(1, 2, 0, 3)
    vh = vp.reshape(Lkv, Bk, num_heads, d).transpose(1, 2, 0, 3)

    s = jnp.einsum("bhqd,bhkd->bhqk", qh, kh) / float(d) ** 0.5
    p = jax.nn.softmax(s, axis=-1)
    oh = jnp.einsum("bhqk,bhkd->bhqd", p, vh)

    o = oh.transpose(2, 0, 1, 3).reshape(Lq * B, E)
    out = o @ params["out_w"].T + params["out_b"]
    return out.reshape(Lq, B, E).transpose(1, 2, 0).reshape(B, E, H, W)


# ---------------------------------------------------------------------------
if __name__ == "__main__":
    # Module hyper-params (in_channels_kv must equal out_channels, see note above)
    in_channels_q = 4
    in_channels_kv = 8
    out_channels = 8
    num_heads = 2

    key = jax.random.PRNGKey(0)
    ks = jax.random.split(key, 10)

    E = out_channels
    params = {
        "q_w": 0.2 * jax.random.normal(ks[0], (E, in_channels_q), jnp.float32),
        "q_b": 0.1 * jax.random.normal(ks[1], (E,), jnp.float32),
        "kv_w": 0.2 * jax.random.normal(ks[2], (2 * E, in_channels_kv), jnp.float32),
        "kv_b": 0.1 * jax.random.normal(ks[3], (2 * E,), jnp.float32),
        "in_w": 0.2 * jax.random.normal(ks[4], (3 * E, E), jnp.float32),
        "in_b": 0.1 * jax.random.normal(ks[5], (3 * E,), jnp.float32),
        "out_w": 0.2 * jax.random.normal(ks[6], (E, E), jnp.float32),
        "out_b": 0.1 * jax.random.normal(ks[7], (E,), jnp.float32),
    }

    # Inputs: NCHW, different spatial sizes for query and key/value streams.
    x_query = jax.random.normal(ks[8], (2, in_channels_q, 8, 8), jnp.float32)
    x_key_value = jax.random.normal(ks[9], (2, in_channels_kv, 4, 4), jnp.float32)

    out = cross_attention_forward(params, x_query, x_key_value, num_heads)
    out = jax.block_until_ready(out)

    ref = reference_forward(params, x_query, x_key_value, num_heads)
    assert out.shape == (2, out_channels, 8, 8), out.shape
    # Tolerance loosened slightly vs pure f32 because the softmax denominator
    # uses the EUP approximate reciprocal (pl.reciprocal(approx=True)).
    assert jnp.allclose(out, ref, atol=2e-3, rtol=2e-3), "mismatch vs reference"

    print("KERNEL_OK")
</pallas_src>

<mosaic_0001>
module attributes {stable_mosaic.version = 11 : i64} {
  func.func @_fused_cross_attn_kernel(%arg0: i32, %arg1: memref<1x4x64xf32, #tpu.memory_space<vmem>>, %arg2: memref<1x8x16xf32, #tpu.memory_space<vmem>>, %arg3: memref<8x4xf32, #tpu.memory_space<vmem>>, %arg4: memref<8x1xf32, #tpu.memory_space<vmem>>, %arg5: memref<16x8xf32, #tpu.memory_space<vmem>>, %arg6: memref<16x1xf32, #tpu.memory_space<vmem>>, %arg7: memref<8x8xf32, #tpu.memory_space<vmem>>, %arg8: memref<8x1xf32, #tpu.memory_space<vmem>>, %arg9: memref<1x8x64xf32, #tpu.memory_space<vmem>>) attributes {dimension_semantics = [#tpu.dimension_semantics<parallel>], iteration_bounds = array<i64: 2>, scalar_prefetch = 0 : i64, scratch_operands = 0 : i64, tpu.core_type = #tpu.core_type<tc>, window_params = [{transform_indices = @transform_0, window_bounds = array<i64: 1, 4, 64>}, {transform_indices = @transform_1, window_bounds = array<i64: 1, 8, 16>}, {pipeline_mode = #tpu.pipeline_mode<synchronous>, transform_indices = @transform_2, window_bounds = array<i64: 8, 4>}, {pipeline_mode = #tpu.pipeline_mode<synchronous>, transform_indices = @transform_3, window_bounds = array<i64: 8, 1>}, {pipeline_mode = #tpu.pipeline_mode<synchronous>, transform_indices = @transform_4, window_bounds = array<i64: 16, 8>}, {pipeline_mode = #tpu.pipeline_mode<synchronous>, transform_indices = @transform_5, window_bounds = array<i64: 16, 1>}, {pipeline_mode = #tpu.pipeline_mode<synchronous>, transform_indices = @transform_6, window_bounds = array<i64: 8, 8>}, {pipeline_mode = #tpu.pipeline_mode<synchronous>, transform_indices = @transform_7, window_bounds = array<i64: 8, 1>}, {transform_indices = @transform_8, window_bounds = array<i64: 1, 8, 64>}]} {
    %c0 = arith.constant 0 : index
    %c0_0 = arith.constant 0 : index
    %0 = vector.load %arg3[%c0, %c0_0] : memref<8x4xf32, #tpu.memory_space<vmem>>, vector<8x4xf32>
    %c0_1 = arith.constant 0 : index
    %c0_2 = arith.constant 0 : index
    %c0_3 = arith.constant 0 : index
    %1 = vector.load %arg1[%c0_1, %c0_2, %c0_3] : memref<1x4x64xf32, #tpu.memory_space<vmem>>, vector<1x4x64xf32>
    %2 = vector.shape_cast %1 : vector<1x4x64xf32> to vector<4x64xf32>
    %cst = arith.constant dense<0.000000e+00> : vector<8x64xf32>
    %3 = tpu.matmul %0, %2, %cst {dimension_numbers = #tpu.dot_dimension_numbers<[1], [0], [0], [1], [0, 0, 1, 1], [], []>} : vector<8x4xf32>, vector<4x64xf32>, vector<8x64xf32> -> vector<8x64xf32>
    %c0_4 = arith.constant 0 : index
    %c0_5 = arith.constant 0 : index
    %4 = vector.load %arg4[%c0_4, %c0_5] : memref<8x1xf32, #tpu.memory_space<vmem>>, vector<8x1xf32>
    %5 = vector.broadcast %4 : vector<8x1xf32> to vector<8x64xf32>
    %6 = arith.addf %3, %5 : vector<8x64xf32>
    %c0_6 = arith.constant 0 : index
    %c0_7 = arith.constant 0 : index
    %7 = vector.load %arg5[%c0_6, %c0_7] : memref<16x8xf32, #tpu.memory_space<vmem>>, vector<16x8xf32>
    %c0_8 = arith.constant 0 : index
    %c0_9 = arith.constant 0 : index
    %c0_10 = arith.constant 0 : index
    %8 = vector.load %arg2[%c0_8, %c0_9, %c0_10] : memref<1x8x16xf32, #tpu.memory_space<vmem>>, vector<1x8x16xf32>
    %9 = vector.shape_cast %8 : vector<1x8x16xf32> to vector<8x16xf32>
    %cst_11 = arith.constant dense<0.000000e+00> : vector<16x16xf32>
    %10 = tpu.matmul %7, %9, %cst_11 {dimension_numbers = #tpu.dot_dimension_numbers<[1], [0], [0], [1], [0, 0, 1, 1], [], []>} : vector<16x8xf32>, vector<8x16xf32>, vector<16x16xf32> -> vector<16x16xf32>
    %c0_12 = arith.constant 0 : index
    %c0_13 = arith.constant 0 : index
    %11 = vector.load %arg6[%c0_12, %c0_13] : memref<16x1xf32, #tpu.memory_space<vmem>>, vector<16x1xf32>
    %12 = vector.broadcast %11 : vector<16x1xf32> to vector<16x16xf32>
    %13 = arith.addf %10, %12 : vector<16x16xf32>
    %14 = vector.extract_strided_slice %13 {offsets = [0, 0], sizes = [8, 16], strides = [1, 1]} : vector<16x16xf32> to vector<8x16xf32>
    %15 = vector.extract_strided_slice %13 {offsets = [8, 0], sizes = [8, 16], strides = [1, 1]} : vector<16x16xf32> to vector<8x16xf32>
    %16 = tpu.transpose %6, [1, 0] : vector<8x64xf32> -> vector<64x8xf32>
    %17 = vector.extract_strided_slice %16 {offsets = [0, 0], sizes = [64, 4], strides = [1, 1]} : vector<64x8xf32> to vector<64x4xf32>
    %18 = vector.extract_strided_slice %14 {offsets = [0, 0], sizes = [4, 16], strides = [1, 1]} : vector<8x16xf32> to vector<4x16xf32>
    %19 = vector.extract_strided_slice %15 {offsets = [0, 0], sizes = [4, 16], strides = [1, 1]} : vector<8x16xf32> to vector<4x16xf32>
    %cst_14 = arith.constant dense<0.000000e+00> : vector<64x16xf32>
    %20 = tpu.matmul %17, %18, %cst_14 {dimension_numbers = #tpu.dot_dimension_numbers<[1], [0], [0], [1], [0, 0, 1, 1], [], []>} : vector<64x4xf32>, vector<4x16xf32>, vector<64x16xf32> -> vector<64x16xf32>
    %cst_15 = arith.constant dense<0xFF800000> : vector<64xf32>
    %21 = vector.multi_reduction <maximumf>, %20, %cst_15 [1] : vector<64x16xf32> to vector<64xf32>
    %22 = vector.shape_cast %21 : vector<64xf32> to vector<64x1xf32>
    %23 = vector.broadcast %22 : vector<64x1xf32> to vector<64x16xf32>
    %24 = arith.subf %20, %23 : vector<64x16xf32>
    %25 = math.exp %24 : vector<64x16xf32>
    %cst_16 = arith.constant dense<0.000000e+00> : vector<64xf32>
    %26 = vector.multi_reduction <add>, %25, %cst_16 [1] : vector<64x16xf32> to vector<64xf32>
    %27 = vector.shape_cast %26 : vector<64xf32> to vector<64x1xf32>
    %28 = tpu.reciprocal %27 {approx = true} : vector<64x1xf32> -> vector<64x1xf32>
    %29 = vector.broadcast %28 : vector<64x1xf32> to vector<64x16xf32>
    %30 = arith.mulf %25, %29 : vector<64x16xf32>
    %cst_17 = arith.constant dense<0.000000e+00> : vector<4x64xf32>
    %31 = tpu.matmul %19, %30, %cst_17 {dimension_numbers = #tpu.dot_dimension_numbers<[1], [1], [0], [0], [0, 0, 1, 0], [], []>} : vector<4x16xf32>, vector<64x16xf32>, vector<4x64xf32> -> vector<4x64xf32>
    %32 = vector.extract_strided_slice %16 {offsets = [0, 4], sizes = [64, 4], strides = [1, 1]} : vector<64x8xf32> to vector<64x4xf32>
    %33 = vector.extract_strided_slice %14 {offsets = [4, 0], sizes = [4, 16], strides = [1, 1]} : vector<8x16xf32> to vector<4x16xf32>
    %34 = vector.extract_strided_slice %15 {offsets = [4, 0], sizes = [4, 16], strides = [1, 1]} : vector<8x16xf32> to vector<4x16xf32>
    %cst_18 = arith.constant dense<0.000000e+00> : vector<64x16xf32>
    %35 = tpu.matmul %32, %33, %cst_18 {dimension_numbers = #tpu.dot_dimension_numbers<[1], [0], [0], [1], [0, 0, 1, 1], [], []>} : vector<64x4xf32>, vector<4x16xf32>, vector<64x16xf32> -> vector<64x16xf32>
    %cst_19 = arith.constant dense<0xFF800000> : vector<64xf32>
    %36 = vector.multi_reduction <maximumf>, %35, %cst_19 [1] : vector<64x16xf32> to vector<64xf32>
    %37 = vector.shape_cast %36 : vector<64xf32> to vector<64x1xf32>
    %38 = vector.broadcast %37 : vector<64x1xf32> to vector<64x16xf32>
    %39 = arith.subf %35, %38 : vector<64x16xf32>
    %40 = math.exp %39 : vector<64x16xf32>
    %cst_20 = arith.constant dense<0.000000e+00> : vector<64xf32>
    %41 = vector.multi_reduction <add>, %40, %cst_20 [1] : vector<64x16xf32> to vector<64xf32>
    %42 = vector.shape_cast %41 : vector<64xf32> to vector<64x1xf32>
    %43 = tpu.reciprocal %42 {approx = true} : vector<64x1xf32> -> vector<64x1xf32>
    %44 = vector.broadcast %43 : vector<64x1xf32> to vector<64x16xf32>
    %45 = arith.mulf %40, %44 : vector<64x16xf32>
    %cst_21 = arith.constant dense<0.000000e+00> : vector<4x64xf32>
    %46 = tpu.matmul %34, %45, %cst_21 {dimension_numbers = #tpu.dot_dimension_numbers<[1], [1], [0], [0], [0, 0, 1, 0], [], []>} : vector<4x16xf32>, vector<64x16xf32>, vector<4x64xf32> -> vector<4x64xf32>
    %47 = tpu.concatenate %31, %46 in 0 : vector<4x64xf32>, vector<4x64xf32> -> vector<8x64xf32>
    %c0_22 = arith.constant 0 : index
    %c0_23 = arith.constant 0 : index
    %48 = vector.load %arg7[%c0_22, %c0_23] : memref<8x8xf32, #tpu.memory_space<vmem>>, vector<8x8xf32>
    %cst_24 = arith.constant dense<0.000000e+00> : vector<8x64xf32>
    %49 = tpu.matmul %48, %47, %cst_24 {dimension_numbers = #tpu.dot_dimension_numbers<[1], [0], [0], [1], [0, 0, 1, 1], [], []>} : vector<8x8xf32>, vector<8x64xf32>, vector<8x64xf32> -> vector<8x64xf32>
    %c0_25 = arith.constant 0 : index
    %c0_26 = arith.constant 0 : index
    %50 = vector.load %arg8[%c0_25, %c0_26] : memref<8x1xf32, #tpu.memory_space<vmem>>, vector<8x1xf32>
    %51 = vector.broadcast %50 : vector<8x1xf32> to vector<8x64xf32>
    %52 = arith.addf %49, %51 : vector<8x64xf32>
    %c0_27 = arith.constant 0 : index
    %c0_28 = arith.constant 0 : index
    %c0_29 = arith.constant 0 : index
    %53 = vector.load %arg9[%c0_27, %c0_28, %c0_29] : memref<1x8x64xf32, #tpu.memory_space<vmem>>, vector<1x8x64xf32>
    %54 = vector.shape_cast %53 : vector<1x8x64xf32> to vector<8x64xf32>
    %55 = vector.shape_cast %52 : vector<8x64xf32> to vector<1x8x64xf32>
    tpu.vector_store %arg9[%c0_27, %c0_28, %c0_29], %55 {strides = array<i32>} : memref<1x8x64xf32, #tpu.memory_space<vmem>>, vector<1x8x64xf32>,
    return
  }
  func.func @transform_0(%arg0: i32) -> (i32, i32, i32) {
    %c0_i32 = arith.constant 0 : i32
    %c0_i32_0 = arith.constant 0 : i32
    %c0_i32_1 = arith.constant 0 : i32
    return %arg0, %c0_i32, %c0_i32_0 : i32, i32, i32
  }
  func.func @transform_1(%arg0: i32) -> (i32, i32, i32) {
    %c0_i32 = arith.constant 0 : i32
    %c0_i32_0 = arith.constant 0 : i32
    %c0_i32_1 = arith.constant 0 : i32
    return %arg0, %c0_i32, %c0_i32_0 : i32, i32, i32
  }
  func.func @transform_2(%arg0: i32) -> (i32, i32) {
    %c0_i32 = arith.constant 0 : i32
    %c0_i32_0 = arith.constant 0 : i32
    %c0_i32_1 = arith.constant 0 : i32
    return %c0_i32, %c0_i32_0 : i32, i32
  }
  func.func @transform_3(%arg0: i32) -> (i32, i32) {
    %c0_i32 = arith.constant 0 : i32
    %c0_i32_0 = arith.constant 0 : i32
    %c0_i32_1 = arith.constant 0 : i32
    return %c0_i32, %c0_i32_0 : i32, i32
  }
  func.func @transform_4(%arg0: i32) -> (i32, i32) {
    %c0_i32 = arith.constant 0 : i32
    %c0_i32_0 = arith.constant 0 : i32
    %c0_i32_1 = arith.constant 0 : i32
    return %c0_i32, %c0_i32_0 : i32, i32
  }
  func.func @transform_5(%arg0: i32) -> (i32, i32) {
    %c0_i32 = arith.constant 0 : i32
    %c0_i32_0 = arith.constant 0 : i32
    %c0_i32_1 = arith.constant 0 : i32
    return %c0_i32, %c0_i32_0 : i32, i32
  }
  func.func @transform_6(%arg0: i32) -> (i32, i32) {
    %c0_i32 = arith.constant 0 : i32
    %c0_i32_0 = arith.constant 0 : i32
    %c0_i32_1 = arith.constant 0 : i32
    return %c0_i32, %c0_i32_0 : i32, i32
  }
  func.func @transform_7(%arg0: i32) -> (i32, i32) {
    %c0_i32 = arith.constant 0 : i32
    %c0_i32_0 = arith.constant 0 : i32
    %c0_i32_1 = arith.constant 0 : i32
    return %c0_i32, %c0_i32_0 : i32, i32
  }
  func.func @transform_8(%arg0: i32) -> (i32, i32, i32) {
    %c0_i32 = arith.constant 0 : i32
    %c0_i32_0 = arith.constant 0 : i32
    %c0_i32_1 = arith.constant 0 : i32
    return %arg0, %c0_i32, %c0_i32_0 : i32, i32, i32
  }
}

</mosaic_0001>

<bundles_post_ra>
// kernel: tpu_custom_call.1
= control target key start
LH: loop header
LB: loop body
LE: loop exit
PB: predicated region body
PF: predicated region fallthrough
CT: control target
= control target key end

     0   :  { %13 = vsyncpa [#allocation3], 0  ;;  %s2122_s0 = inlined_call_operand.vmem [shape: f32[2,4,64], index: 0, kind: input, shape index: {}]   ;;  %s2123_s1 = inlined_call_operand.vmem [shape: f32[2,8,16], index: 1, kind: input, shape index: {}]   ;;  %s2124_s2 = inlined_call_operand.vmem [shape: f32[8,4], index: 2, kind: input, shape index: {}]   ;;  %s2125_s3 = inlined_call_operand.vmem [shape: f32[8,1], index: 3, kind: input, shape index: {}]   ;;  %s2126_s4 = inlined_call_operand.vmem [shape: f32[16,8], index: 4, kind: input, shape index: {}]   ;;  %s2127_s5 = inlined_call_operand.vmem [shape: f32[16,1], index: 5, kind: input, shape index: {}]   ;;  %s2128_s6 = inlined_call_operand.vmem [shape: f32[8,8], index: 6, kind: input, shape index: {}]   ;;  %s2129_s7 = inlined_call_operand.vmem [shape: f32[8,1], index: 7, kind: input, shape index: {}]   ;;  %s2130_s8 = inlined_call_operand.hbm [shape: f32[2,8,64], index: 8, kind: output, shape index: {}]  }
   0x1   :  { %15 = vsyncpa [#allocation3 + $0x1], 0  ;;  %s1780_s27 = smov 0   ;;  %s1782_s28 = smov 0  }
   0x2   :  { %s1784_s29 = smov 0   ;;  %s1786_s30 = smov 0  }
   0x3 LB: > { %s1801_s9 = sadd.s32 4294967295, %s1727_s30   ;;  %s1347_s10 = sadd.s32 4294967294, %s1727_s30   ;;  %s1727_s30 = sphi %s1786_s30, %s2138_s30   ;;  %s1723_s29 = sphi %s1784_s29, %s2137_s29   ;;  %s1719_s28 = sphi %s1782_s28, %s2136_s28   ;;  %s1715_s27 = sphi %s1780_s27, %s2135_s27  }
   0x4   : > { %s1805_s11 = sadd.s32 1, %s1727_s30   ;;  %s206_s12 = sadd.s32 1, %s1723_s29 }
   0x5   : > { %s203_s13 = ssub.s32 %s1727_s30, %s1805_s11  ;;  %p216_p0 = scmp.ne.s32.totalorder %s1723_s29, %s1719_s28 }
   0x6   : > { %p204_p1 = scmp.eq.s32.totalorder %s203_s13, 0  ;;  %p217_p2 = scmp.eq.s32.totalorder %s1801_s9, 1 }
   0x7   : > { %p222_p3 = scmp.ne.s32.totalorder %s1719_s28, %s1715_s27  ;;  %p223_p4 = scmp.eq.s32.totalorder %s1347_s10, 1 }
   0x8   : > { %s1816_s14 = scalar_select %p204_p1, %s1723_s29, %s206_s12  }
   0x9   : > { %p1818_p5 = por %p217_p2, %p216_p0  ;;  %p1822_p6 = por %p223_p4, %p222_p3 }
   0xa   : > { %p1350_p7 = scmp.ge.s32.totalorder %s1727_s30, 1  ;;  %p273_p8 = scmp.lt.s32.totalorder %s1727_s30, 3 }
   0xc   : > { %p274_p9 = pnand %p1350_p7, %p273_p8 }
   0xd   : > { %p310_p10 = scmp.lt.s32.totalorder (!%p274_p9), %s1801_s9, 1  ;;  %v1729_v0 = vmov (!%p274_p9), 0.0   ;;  %vm1730_vm0 = vmmov (!%p274_p9), 0   ;;  %v320_v1 = vld [vmem:[%s2125_s3] sm:$0xff] (!%p274_p9)  ;;  %vm419_vm1 = vcmask (!%p274_p9), 64512   ;;  %v1731_v3 = vmov (!%p274_p9), 0  }
   0xe   : > { %277 = sbr.rel (%p274_p9) target bundleno = 1524 (0x5f4), region = 52  ;;  %1442 = vmatprep.subr.mxu0 (!%p274_p9), %v1729_v0  ;;  %1444 = vmatprep.mubr.msk.f32.mxu0 (!%p274_p9), %vm1730_vm0, %v1729_v0  ;;  %v404_v2 = vld [vmem:[%s2126_s4] sm:$0xff] (!%p274_p9)  ;;  %vm330_vm2 = vcmask (!%p274_p9), 1043456   ;;  %vm326_vm3 = vcmask (!%p274_p9), 31744   ;;  %v405_v7 = vld [vmem:[%s2126_s4 + $0x8] sm:$0xff] (!%p274_p9)  ;;  %vm665_vm4 = vcmask (!%p274_p9), 130048  }
   0xf   : > { %1599 = vset.pattern.permute.xlu0 (!%p274_p9), %v1731_v3  ;;  %1449 = vmatprep.mubr.msk.f32.mxu1 (!%p274_p9), %vm419_vm1, %v404_v2  ;;  %v318_v4 = vld [vmem:[%s2124_s2] sm:$0xff] (!%p274_p9)  ;;  %vm2024_vm5 = vmpackc.low (!%p274_p9), %vm665_vm4, %vm665_vm4  ;;  %s307_s17 = sand.u32 (!%p274_p9), 1, %s1719_s28   ;;  %s1396_s19 = sshll.u32 (!%p274_p9), %s1801_s9, 7  ;;  %vm1260_vm6 = vcmask (!%p274_p9), 523264  }
  0x10   : > { %323 = vperm.xlu0 (!%p274_p9), %1599, %v320_v1   ;;  %1600 = vset.pattern.permute.xlu1 (!%p274_p9), %v1731_v3  ;;  %v407_v8 = vld [vmem:[%s2127_s5] sm:$0xff] (!%p274_p9)  ;;  %s2080_s24 = scalar_lea.hbm (!%p274_p9), %s2130_s8, %s1396_s19  ;;  %s1263_s25 = scalar_lea.sflag (!%p274_p9), [#allocation3], %s307_s17 }
  0x11   : > { %411 = vperm.xlu1 (!%p274_p9), %1600, %v407_v8  }
  0x15   : > { %s311_s21 = scalar_select %p310_p10, %s1801_s9, 1 }
  0x17   : > { %s1352_s22 = sshll.u32 %s311_s21, 2  ;;  %s1353_s23 = sshll.u32 %s311_s21, 3 }
  0x18   : > { %s313_s26 = scalar_lea.vmem %s2122_s0, %s1352_s22  ;;  %s317_s18 = scalar_lea.vmem %s2123_s1, %s1353_s23 }
  0x19   : > { %v319_v5 = vld [vmem:[%s313_s26] sm:$0xf]  ;;  %s1732_s23 = smov 124   ;;  %s1734_s26 = smov [#allocation2]  }
  0x1a   : > { %v406_v6 = vld [vmem:[%s317_s18] sm:$0xff]  ;;  %1443 = vmatpush3.msk.msra.mxu0 %vm330_vm2, %v319_v5  ;;  %s1351_s18 = sshll.u32 %s307_s17, 3  ;;  %s1669_s10 = sshll.u32 %s1734_s26, 4  ;;  %s1670_s10 = int_to_ptr.vmem [resolvable:$false] %s1669_s10 }
  0x1b   : > { %1447 = vmatprep.subr.mxu1 %v406_v6  ;;  %1445 = vmatmul.mubr.msk.f32.vlgmr.msra.gmra.mrb[0].mxu0 %vm326_vm3, %v318_v4  ;;  %s309_s20 = scalar_lea.vmem [#allocation2], %s1351_s18  ;;  %s1671_s12 = scalar_lea.vmem %s1670_s10, 256 }
  0x1c   : > { %1448 = vmatpush3.msra.mxu1 %v406_v6  ;;  %s1276_s21 = sshll.u32 %s309_s20, 4  ;;  %s2082_s21 = int_to_ptr.vmem [resolvable:$true] %s1276_s21 }
  0x1d   : > { %1450 = vmatmul.mubr.msk.f32.vlgmr.msra.gmra.mrb[0].mxu1 %vm419_vm1, %v405_v7  ;;  %s1665_s9 = scalar_lea.vmem %s2082_s21, 128  ;;  %p1672_p0 = scmp.lt.s32.totalorder %s2082_s21, %s1670_s10 }
  0x1e   : > { %p1666_p11 = scmp.ne.s32.totalorder %s2082_s21, %s1665_s9  ;;  %p1673_p1 = scmp.lt.s32.totalorder %s1671_s12, %s1665_s9 }
  0x20   : > { %p1667_p12 = pnand %p1666_p11, %p1818_p5  ;;  %p1674_p2 = por %p1673_p1, %p1672_p0 }
  0x22   : > { %p1668_p13 = pneg %p1667_p12 }
  0x24   : > { %p1675_p3 = pnand %p1674_p2, %p1668_p13 }
  0x8f   : > { %v324_v9 = vpop.permute.xlu0 %323 }
  0x90   : > { %v412_v15 = vpop.permute.xlu1 %411 }
  0xee   : > { %v400_v10 = vpop.f32.mrb[0].mxu0 }
  0xef   : > { %v401_v11 = vadd.f32 %v400_v10, %v324_v9  ;;  %v1446_v12 = vpop.f32.mrb[1].mxu0 }
  0xf0   : > { %v1858_v13 = vpop.f32.mrb[0].mxu1 }
  0xf1   : > { %v492_v14 = vpop.f32.mrb[1].mxu1  ;;  %501 = vxpose.xlu0.b32.start.end [1/1] (short) (narrow) %v401_v11, 64 }
  0xf2   : > { %v493_v16 = vadd.f32 %v492_v14, %v412_v15 }
  0xf4   : > { %v867_v17 = vrot.slane %v493_v16, 4  ;;  %1452 = vmatprep.subr.msk.mxu1 %vm330_vm2, %v493_v16 }
  0xf5   : > { %1453 = vmatpush3.msk.msra.mxu1 %vm330_vm2, %v493_v16 }
  0xf6   : > { %1485 = vmatprep.subr.msk.mxu0 %vm330_vm2, %v867_v17 }
  0xf7   : > { %1486 = vmatpush3.msk.msra.mxu0 %vm330_vm2, %v867_v17 }
 0x171   : > { %v517_v18 = vpop.trf.xlu0 }
 0x172   : > { %1454 = vmatprep.mubr.msk.f32.mxu1 %vm326_vm3, %v517_v18  ;;  %851 = vrot.lane.b32.xlu1 %v517_v18, %s1732_s23 }
 0x175   : > { %v518_v19 = vpop.trf.xlu0 }
 0x176   : > { %1455 = vmatmul.mubr.msk.f32.vlgmr.msra.gmra.mrb[2].mxu1 %vm326_vm3, %v518_v19  ;;  %853 = vrot.lane.b32.xlu1 %v518_v19, %s1732_s23 }
 0x179   : > { %v519_v20 = vpop.trf.xlu0 }
 0x17a   : > { %855 = vrot.lane.b32.xlu1 %v519_v20, %s1732_s23  ;;  %1457 = vmatprep.mubr.msk.f32.mxu1 %vm326_vm3, %v519_v20 }
 0x17d   : > { %v520_v21 = vpop.trf.xlu0 }
 0x17e   : > { %857 = vrot.lane.b32.xlu1 %v520_v21, %s1732_s23  ;;  %1458 = vmatmul.mubr.msk.f32.gmra.mrb[4].mxu1 %vm326_vm3, %v520_v21 }
 0x181   : > { %v521_v22 = vpop.trf.xlu0 }
 0x182   : > { %859 = vrot.lane.b32.xlu1 %v521_v22, %s1732_s23  ;;  %1460 = vmatprep.mubr.msk.f32.mxu1 %vm326_vm3, %v521_v22 }
 0x185   : > { %v522_v23 = vpop.trf.xlu0 }
 0x186   : > { %861 = vrot.lane.b32.xlu1 %v522_v23, %s1732_s23  ;;  %1461 = vmatmul.mubr.msk.f32.gmra.mrb[6].mxu1 %vm326_vm3, %v522_v23 }
 0x189   : > { %v523_v24 = vpop.trf.xlu0 }
 0x18a   : > { %863 = vrot.lane.b32.xlu1 %v523_v24, %s1732_s23  ;;  %1463 = vmatprep.mubr.msk.f32.mxu1 %vm326_vm3, %v523_v24 }
 0x18d   : > { %v524_v25 = vpop.trf.xlu0 }
 0x18e   : > { %865 = vrot.lane.b32.xlu1 %v524_v25, %s1732_s23  ;;  %1464 = vmatmul.mubr.msk.f32.gmra.mrb[8].mxu1 %vm326_vm3, %v524_v25 }
 0x18f   : > { %1482 = vmatprep.mubr.msk.f32.mxu1 %vm1730_vm0, %v1729_v0 }
 0x1e4   : > { %v852_v26 = vpop.permute.xlu1 %851 }
 0x1e5   : > { %1487 = vmatprep.mubr.msk.f32.mxu0 %vm326_vm3, %v852_v26 }
 0x1e8   : > { %v854_v27 = vpop.permute.xlu1 %853 }
 0x1e9   : > { %1488 = vmatmul.mubr.msk.f32.vlgmr.msra.gmra.mrb[2].mxu0 %vm326_vm3, %v854_v27 }
 0x1ec   : > { %v856_v28 = vpop.permute.xlu1 %855 }
 0x1ed   : > { %1490 = vmatprep.mubr.msk.f32.mxu0 %vm326_vm3, %v856_v28 }
 0x1f0   : > { %v858_v29 = vpop.permute.xlu1 %857 }
 0x1f1   : > { %1491 = vmatmul.mubr.msk.f32.gmra.mrb[4].mxu0 %vm326_vm3, %v858_v29 }
 0x1f4   : > { %v860_v30 = vpop.permute.xlu1 %859 }
 0x1f5   : > { %1493 = vmatprep.mubr.msk.f32.mxu0 %vm326_vm3, %v860_v30 }
 0x1f8   : > { %v862_v31 = vpop.permute.xlu1 %861 }
 0x1f9   : > { %1494 = vmatmul.mubr.msk.f32.gmra.mrb[6].mxu0 %vm326_vm3, %v862_v31 }
 0x1fc   : > { %v864_v32 = vpop.permute.xlu1 %863 }
 0x1fd   : > { %1496 = vmatprep.mubr.msk.f32.mxu0 %vm326_vm3, %v864_v32 }
 0x200   : > { %v866_v33 = vpop.permute.xlu1 %865 }
 0x201   : > { %1497 = vmatmul.mubr.msk.f32.gmra.mrb[8].mxu0 %vm326_vm3, %v866_v33 }
 0x202   : > { %1515 = vmatprep.mubr.msk.f32.mxu0 %vm1730_vm0, %v1729_v0 }
 0x249   : > { %v1456_v34 = vpop.f32.mrb[2].mxu1 }
 0x24a   : > { %v626_v35 = vpop.f32.mrb[3].mxu1  ;;  %v669_v49 = vsel %vm665_vm4, %v1456_v34, -inf }
 0x24b   : > { %v666_v46 = vsel %vm665_vm4, %v626_v35, -inf }
 0x251   : > { %v1884_v36 = vpop.f32.mrb[4].mxu1 }
 0x252   : > { %v1886_v37 = vpop.f32.mrb[5].mxu1  ;;  %v675_v53 = vsel %vm665_vm4, %v1884_v36, -inf }
 0x253   : > { %v672_v51 = vsel %vm665_vm4, %v1886_v37, -inf }
 0x259   : > { %v1888_v38 = vpop.f32.mrb[6].mxu1 }
 0x25a   : > { %v1890_v39 = vpop.f32.mrb[7].mxu1  ;;  %v681_v47 = vsel %vm665_vm4, %v1888_v38, -inf }
 0x25b   : > { %v678_v63 = vsel %vm665_vm4, %v1890_v39, -inf }
 0x261   : > { %v1892_v40 = vpop.f32.mrb[8].mxu1 }
 0x262   : > { %v1894_v41 = vpop.f32.mrb[9].mxu1  ;;  %v687_v61 = vsel %vm665_vm4, %v1892_v40, -inf }
 0x263   : > { %v684_v2 = vsel %vm665_vm4, %v1894_v41, -inf }
 0x2bc   : > { %v1489_v42 = vpop.f32.mrb[2].mxu0 }
 0x2bd   : > { %v952_v43 = vpop.f32.mrb[3].mxu0  ;;  %v994_v44 = vsel %vm665_vm4, %v1489_v42, -inf }
 0x2be   : > { %995 = vmax.xlane.f32.xlu1 %v994_v44  ;;  %v991_v45 = vsel %vm665_vm4, %v952_v43, -inf }
 0x2bf   : > { %992 = vmax.xlane.f32.xlu0 %v991_v45 }
 0x2c2   : > { %667 = vmax.xlane.f32.xlu1 %v666_v46 }
 0x2c3   : > { %682 = vmax.xlane.f32.xlu0 %v681_v47 }
 0x2c4   : > { %v1901_v48 = vpop.f32.mrb[4].mxu0 }
 0x2c5   : > { %v1904_v50 = vpop.f32.mrb[5].mxu0  ;;  %v1000_v55 = vsel %vm665_vm4, %v1901_v48, -inf }
 0x2c6   : > { %670 = vmax.xlane.f32.xlu1 %v669_v49  ;;  %v997_v57 = vsel %vm665_vm4, %v1904_v50, -inf }
 0x2ca   : > { %673 = vmax.xlane.f32.xlu1 %v672_v51 }
 0x2cc   : > { %v1908_v52 = vpop.f32.mrb[6].mxu0 }
 0x2cd   : > { %v1912_v54 = vpop.f32.mrb[7].mxu0  ;;  %v1006_v60 = vsel %vm665_vm4, %v1908_v52, -inf }
 0x2ce   : > { %676 = vmax.xlane.f32.xlu1 %v675_v53  ;;  %v1003_v62 = vsel %vm665_vm4, %v1912_v54, -inf }
 0x2d2   : > { %1001 = vmax.xlane.f32.xlu1 %v1000_v55 }
 0x2d4   : > { %v1916_v56 = vpop.f32.mrb[8].mxu0 }
 0x2d5   : > { %v1012_v58 = vsel %vm665_vm4, %v1916_v56, -inf  ;;  %v1922_v59 = vpop.f32.mrb[9].mxu0 }
 0x2d6   : > { %998 = vmax.xlane.f32.xlu1 %v997_v57  ;;  %1013 = vmax.xlane.f32.xlu0 %v1012_v58  ;;  %v1009_v1 = vsel %vm665_vm4, %v1922_v59, -inf }
 0x2da   : > { %1007 = vmax.xlane.f32.xlu1 %v1006_v60  ;;  %688 = vmax.xlane.f32.xlu0 %v687_v61 }
 0x2de   : > { %1004 = vmax.xlane.f32.xlu1 %v1003_v62 }
 0x2e2   : > { %679 = vmax.xlane.f32.xlu1 %v678_v63 }
 0x2e6   : > { %1010 = vmax.xlane.f32.xlu1 %v1009_v1 }
 0x2ea   : > { %685 = vmax.xlane.f32.xlu1 %v684_v2 }
 0x34b   : > { %v996_v3 = vpop.xlane.xlu1 %995 }
 0x34c   : > { %v1016_v4 = vsub.f32 %v1489_v42, %v996_v3  ;;  %v993_v9 = vpop.xlane.xlu0 %992 }
 0x34d   : > { %v1015_v12 = vsub.f32 %v952_v43, %v993_v9 }
 0x34e   : > { %v1025_v5 = vmul.f32 1.442695, %v1016_v4 }
 0x34f   : > { %v668_v6 = vpop.xlane.xlu1 %667  ;;  %v1023_v18 = vmul.f32 1.442695, %v1015_v12 }
 0x350   : > { %1601 = vpow2.f32 %v1025_v5  ;;  %v690_v7 = vsub.f32 %v626_v35, %v668_v6  ;;  %v683_v27 = vpop.xlane.xlu0 %682 }
 0x351   : > { %v695_v35 = vsub.f32 %v1888_v38, %v683_v27 }
 0x352   : > { %v698_v8 = vmul.f32 1.442695, %v690_v7 }
 0x353   : > { %v671_v10 = vpop.xlane.xlu1 %670  ;;  %v708_v44 = vmul.f32 1.442695, %v695_v35 }
 0x354   : > { %1603 = vpow2.f32 %v698_v8  ;;  %v691_v11 = vsub.f32 %v1456_v34, %v671_v10 }
 0x356   : > { %v700_v14 = vmul.f32 1.442695, %v691_v11 }
 0x357   : > { %v674_v15 = vpop.xlane.xlu1 %673 }
 0x358   : > { %1605 = vpow2.f32 %v700_v14  ;;  %v692_v16 = vsub.f32 %v1886_v37, %v674_v15  ;;  %v1733_v14 = vmov 0.0|0.0  }
 0x359   : > { %1523 = vmatprep.subr.bf16.mxu1 %v1733_v14  ;;  %1539 = vmatprep.subr.bf16.mxu0 %v1733_v14 }
 0x35a   : > { %v1937_v17 = vpop.eup %1601  ;;  %v702_v19 = vmul.f32 1.442695, %v692_v16 }
 0x35b   : > { %v677_v20 = vpop.xlane.xlu1 %676  ;;  %v1042_v21 = vsel %vm665_vm4, %v1937_v17, 0.0 }
 0x35c   : > { %1607 = vpow2.f32 %v702_v19  ;;  %1043 = vadd.xlane.f32.xlu0 %v1042_v21  ;;  %v693_v23 = vsub.f32 %v1884_v36, %v677_v20 }
 0x35d   : > { %1609 = vpow2.f32 %v1023_v18 }
 0x35e   : > { %v1941_v22 = vpop.eup %1603  ;;  %v704_v29 = vmul.f32 1.442695, %v693_v23 }
 0x35f   : > { %v1002_v24 = vpop.xlane.xlu1 %1001  ;;  %v714_v25 = vsel %vm665_vm4, %v1941_v22, 0.0 }
 0x360   : > { %v1018_v26 = vsub.f32 %v1901_v48, %v1002_v24  ;;  %715 = vadd.xlane.f32.xlu1 %v714_v25  ;;  %v1181_v25 = vld [vmem:[%s2129_s7] sm:$0xff] }
 0x362   : > { %v1947_v28 = vpop.eup %1605  ;;  %v1029_v30 = vmul.f32 1.442695, %v1018_v26  ;;  %v408_v26 = vld [vmem:[%s2127_s5 + $0x8] sm:$0xff] }
 0x363   : > { %v999_v31 = vpop.xlane.xlu1 %998  ;;  %v717_v32 = vsel %vm665_vm4, %v1947_v28, 0.0  ;;  %v1014_v33 = vpop.xlane.xlu0 %1013 }
 0x364   : > { %1611 = vpow2.f32 %v1029_v30  ;;  %718 = vadd.xlane.f32.xlu0 %v717_v32  ;;  %v1022_v45 = vsub.f32 %v1916_v56, %v1014_v33  ;;  %v1017_v38 = vsub.f32 %v1904_v50, %v999_v31 }
 0x365   : > { %1613 = vpow2.f32 %v704_v29 }
 0x366   : > { %v1951_v34 = vpop.eup %1607  ;;  %v1037_v53 = vmul.f32 1.442695, %v1022_v45  ;;  %v1027_v60 = vmul.f32 1.442695, %v1017_v38 }
 0x367   : > { %v1008_v36 = vpop.xlane.xlu1 %1007  ;;  %v720_v37 = vsel %vm665_vm4, %v1951_v34, 0.0  ;;  %v1956_v42 = vpop.eup %1609 }
 0x368   : > { %v1020_v43 = vsub.f32 %v1908_v52, %v1008_v36  ;;  %721 = vadd.xlane.f32.xlu1 %v720_v37  ;;  %v689_v47 = vpop.xlane.xlu0 %688  ;;  %v1039_v49 = vsel %vm665_vm4, %v1956_v42, 0.0 }
 0x369   : > { %v697_v52 = vsub.f32 %v1892_v40, %v689_v47 }
 0x36a   : > { %v1033_v46 = vmul.f32 1.442695, %v1020_v43 }
 0x36b   : > { %v1005_v48 = vpop.xlane.xlu1 %1004  ;;  %v712_v61 = vmul.f32 1.442695, %v697_v52 }
 0x36c   : > { %1615 = vpow2.f32 %v1033_v46  ;;  %1040 = vadd.xlane.f32.xlu1 %v1039_v49  ;;  %v1019_v1 = vsub.f32 %v1912_v54, %v1005_v48 }
 0x36d   : > { %1617 = vpow2.f32 %v708_v44 }
 0x36e   : > { %v1963_v51 = vpop.eup %1611  ;;  %1619 = vpow2.f32 %v1037_v53  ;;  %v1031_v5 = vmul.f32 1.442695, %v1019_v1 }
 0x36f   : > { %v680_v55 = vpop.xlane.xlu1 %679  ;;  %v1048_v56 = vsel %vm665_vm4, %v1963_v51, 0.0  ;;  %v1968_v57 = vpop.eup %1613 }
 0x370   : > { %v694_v58 = vsub.f32 %v1890_v39, %v680_v55  ;;  %1049 = vadd.xlane.f32.xlu0 %v1048_v56  ;;  %v723_v63 = vsel %vm665_vm4, %v1968_v57, 0.0 }
 0x372   : > { %v706_v62 = vmul.f32 1.442695, %v694_v58 }
 0x373   : > { %v1011_v50 = vpop.xlane.xlu1 %1010 }
 0x374   : > { %1621 = vpow2.f32 %v706_v62  ;;  %724 = vadd.xlane.f32.xlu0 %v723_v63  ;;  %v1021_v6 = vsub.f32 %v1922_v59, %v1011_v50 }
 0x375   : > { %1623 = vpow2.f32 %v1027_v60 }
 0x376   : > { %v1973_v40 = vpop.eup %1615  ;;  %1625 = vpow2.f32 %v712_v61  ;;  %v1035_v10 = vmul.f32 1.442695, %v1021_v6 }
 0x377   : > { %v686_v2 = vpop.xlane.xlu1 %685  ;;  %v1054_v39 = vsel %vm665_vm4, %v1973_v40, 0.0  ;;  %v1978_v3 = vpop.eup %1617 }
 0x378   : > { %v696_v4 = vsub.f32 %v1894_v41, %v686_v2  ;;  %1055 = vadd.xlane.f32.xlu0 %v1054_v39  ;;  %v729_v8 = vsel %vm665_vm4, %v1978_v3, 0.0  ;;  %v1984_v9 = vpop.eup %1619 }
 0x379   : > { %v1060_v41 = vsel %vm665_vm4, %v1984_v9, 0.0 }
 0x37a   : > { %v710_v7 = vmul.f32 1.442695, %v696_v4 }
 0x37c   : > { %1627 = vpow2.f32 %v710_v7  ;;  %730 = vadd.xlane.f32.xlu0 %v729_v8 }
 0x37d   : > { %1629 = vpow2.f32 %v1031_v5 }
 0x37e   : > { %v1986_v54 = vpop.eup %1621  ;;  %1631 = vpow2.f32 %v1035_v10 }
 0x37f   : > { %v1988_v11 = vpop.eup %1623  ;;  %v726_v59 = vsel %vm665_vm4, %v1986_v54, 0.0 }
 0x380   : > { %v1994_v12 = vpop.eup %1625  ;;  %1061 = vadd.xlane.f32.xlu0 %v1060_v41  ;;  %727 = vadd.xlane.f32.xlu1 %v726_v59  ;;  %v1045_v16 = vsel %vm665_vm4, %v1988_v11, 0.0 }
 0x381   : > { %v735_v15 = vsel %vm665_vm4, %v1994_v12, 0.0 }
 0x384   : > { %736 = vadd.xlane.f32.xlu0 %v735_v15  ;;  %1046 = vadd.xlane.f32.xlu1 %v1045_v16 }
 0x386   : > { %v2002_v18 = vpop.eup %1627 }
 0x387   : > { %v732_v19 = vsel %vm665_vm4, %v2002_v18, 0.0  ;;  %v2006_v20 = vpop.eup %1629 }
 0x388   : > { %733 = vadd.xlane.f32.xlu1 %v732_v19  ;;  %v1051_v21 = vsel %vm665_vm4, %v2006_v20, 0.0  ;;  %v2010_v23 = vpop.eup %1631 }
 0x389   : > { %v1057_v24 = vsel %vm665_vm4, %v2010_v23, 0.0 }
 0x38c   : > { %1052 = vadd.xlane.f32.xlu1 %v1051_v21 }
 0x390   : > { %1058 = vadd.xlane.f32.xlu1 %v1057_v24 }
 0x39a   : > { %1184 = vperm.xlu0 %1599, %v1181_v25  }
 0x3a1   : > { %416 = vperm.xlu1 %1600, %v408_v26  }
 0x3e9   : > { %v1044_v27 = vpop.xlane.xlu0 %1043 }
 0x3ed   : > { %v716_v29 = vpop.xlane.xlu1 %715 }
 0x3ee   : > { %1633 = vrcp.f32 %v716_v29 }
 0x3f1   : > { %v719_v30 = vpop.xlane.xlu0 %718 }
 0x3f2   : > { %1635 = vrcp.f32 %v719_v30 }
 0x3f3   : > { %1637 = vrcp.f32 %v1044_v27 }
 0x3f5   : > { %v722_v31 = vpop.xlane.xlu1 %721 }
 0x3f8   : > { %v1634_v33 = vpop.eup %1633 }
 0x3f9   : > { %v1041_v32 = vpop.xlane.xlu1 %1040  ;;  %v746_v36 = vmul.f32 %v1634_v33, %v1941_v22 }
 0x3fa   : > { %1639 = vrcp.f32 %v1041_v32 }
 0x3fb   : > { %1641 = vrcp.f32 %v722_v31 }
 0x3fc   : > { %v1636_v35 = vpop.eup %1635 }
 0x3fd   : > { %v747_v37 = vmul.f32 %v1636_v35, %v1947_v28  ;;  %v1050_v43 = vpop.xlane.xlu0 %1049  ;;  %v1638_v47 = vpop.eup %1637 }
 0x3fe   : > { %v1072_v28 = vmul.f32 %v1638_v47, %v1937_v17 }
 0x3ff   : > { %v1524_v45 = vpack.c.bf16 %v747_v37, %v746_v36 }
 0x401   : > { %v725_v46 = vpop.xlane.xlu0 %724  ;;  %1526 = vmatpush3.bf16.xpose.msk.msra.mxu1 %vm2024_vm5, %v1524_v45 }
 0x402   : > { %1643 = vrcp.f32 %v725_v46  ;;  %1527 = vmatprep.subr.bf16.mxu1 %v1733_v14 }
 0x404   : > { %v1640_v22 = vpop.eup %1639 }
 0x405   : > { %v1071_v48 = vmul.f32 %v1640_v22, %v1956_v42  ;;  %v1056_v49 = vpop.xlane.xlu0 %1055  ;;  %v1642_v52 = vpop.eup %1641 }
 0x406   : > { %v748_v56 = vmul.f32 %v1642_v52, %v1951_v34 }
 0x407   : > { %v1540_v38 = vpack.c.bf16 %v1072_v28, %v1071_v48 }
 0x409   : > { %v731_v53 = vpop.xlane.xlu0 %730  ;;  %1542 = vmatpush3.bf16.xpose.msk.msra.mxu0 %vm2024_vm5, %v1540_v38 }
 0x40a   : > { %1543 = vmatprep.subr.bf16.mxu0 %v1733_v14  ;;  %1645 = vrcp.f32 %v731_v53 }
 0x40c   : > { %v1644_v55 = vpop.eup %1643 }
 0x40d   : > { %v749_v58 = vmul.f32 %v1644_v55, %v1968_v57  ;;  %v1062_v60 = vpop.xlane.xlu0 %1061  ;;  %v728_v61 = vpop.xlane.xlu1 %727 }
 0x40e   : > { %1647 = vrcp.f32 %v728_v61 }
 0x40f   : > { %v1528_v17 = vpack.c.bf16 %v749_v58, %v748_v56  ;;  %1649 = vrcp.f32 %v1050_v43 }
 0x411   : > { %v737_v42 = vpop.xlane.xlu0 %736  ;;  %1530 = vmatpush3.bf16.xpose.msk.msra.mxu1 %vm2024_vm5, %v1528_v17  ;;  %v1047_v62 = vpop.xlane.xlu1 %1046 }
 0x412   : > { %1531 = vmatprep.subr.bf16.mxu1 %v1733_v14  ;;  %1651 = vrcp.f32 %v1047_v62 }
 0x413   : > { %1653 = vrcp.f32 %v737_v42 }
 0x414   : > { %v1646_v34 = vpop.eup %1645 }
 0x415   : > { %v734_v50 = vpop.xlane.xlu1 %733  ;;  %v751_v1 = vmul.f32 %v1646_v34, %v1978_v3 }
 0x416   : > { %1655 = vrcp.f32 %v734_v50 }
 0x417   : > { %1657 = vrcp.f32 %v1056_v49 }
 0x418   : > { %v1648_v57 = vpop.eup %1647 }
 0x419   : > { %v1053_v63 = vpop.xlane.xlu1 %1052  ;;  %v750_v2 = vmul.f32 %v1648_v57, %v1986_v54  ;;  %v1650_v39 = vpop.eup %1649 }
 0x41a   : > { %1659 = vrcp.f32 %v1053_v63  ;;  %v1074_v8 = vmul.f32 %v1650_v39, %v1963_v51 }
 0x41b   : > { %v1532_v4 = vpack.c.bf16 %v751_v1, %v750_v2 }
 0x41c   : > { %v1652_v5 = vpop.eup %1651 }
 0x41d   : > { %v1059_v6 = vpop.xlane.xlu1 %1058  ;;  %v1654_v7 = vpop.eup %1653  ;;  %v1073_v10 = vmul.f32 %v1652_v5, %v1988_v11  ;;  %1534 = vmatpush3.bf16.xpose.msk.msra.mxu1 %vm2024_vm5, %v1532_v4 }
 0x41e   : > { %1661 = vrcp.f32 %v1059_v6  ;;  %1535 = vmatprep.subr.bf16.mxu1 %v1733_v14  ;;  %v753_v54 = vmul.f32 %v1654_v7, %v1994_v12 }
 0x41f   : > { %v1544_v3 = vpack.c.bf16 %v1074_v8, %v1073_v10  ;;  %1663 = vrcp.f32 %v1062_v60 }
 0x420   : > { %v1656_v41 = vpop.eup %1655 }
 0x421   : > { %v752_v59 = vmul.f32 %v1656_v41, %v2002_v18  ;;  %v1658_v15 = vpop.eup %1657  ;;  %1546 = vmatpush3.bf16.xpose.msk.msra.mxu0 %vm2024_vm5, %v1544_v3  ;;  %v417_v12 = vpop.permute.xlu1 %416 }
 0x422   : > { %1547 = vmatprep.subr.bf16.mxu0 %v1733_v14  ;;  %v1076_v16 = vmul.f32 %v1658_v15, %v1973_v40  ;;  %v498_v25 = vadd.f32 %v1858_v13, %v417_v12 }
 0x423   : > { %v1536_v51 = vpack.c.bf16 %v753_v54, %v752_v59 }
 0x424   : > { %v1660_v11 = vpop.eup %1659  ;;  %v1079_v27 = vrot.slane %v498_v25, 4 }
 0x425   : > { %v1075_v19 = vmul.f32 %v1660_v11, %v2006_v20  ;;  %1538 = vmatpush3.bf16.xpose.msk.msra.mxu1 %vm2024_vm5, %v1536_v51 }
 0x426   : > { %1518 = vmatprep.subr.mxu1 %v1729_v0 }
 0x427   : > { %v1548_v21 = vpack.c.bf16 %v1076_v16, %v1075_v19 }
 0x428   : > { %v1662_v18 = vpop.eup %1661 }
 0x429   : > { %1550 = vmatpush3.bf16.xpose.msk.msra.mxu0 %vm2024_vm5, %v1548_v21  ;;  %v1664_v24 = vpop.eup %1663  ;;  %v1077_v40 = vmul.f32 %v1662_v18, %v2010_v23 }
 0x42a   : > { %1551 = vmatprep.subr.bf16.mxu0 %v1733_v14  ;;  %v1078_v20 = vmul.f32 %v1664_v24, %v1984_v9  ;;  %v1180_v9 = vld [vmem:[%s2128_s6] sm:$0xff] }
 0x42c   : > { %1483 = vmatmul.mubr.msk.f32.vlgmr.msra.gmra.mrb[10].mxu1 %vm665_vm4, %v498_v25  ;;  %v1552_v26 = vpack.c.bf16 %v1078_v20, %v1077_v40 }
 0x42d   : > { %1520 = vmatprep.mubr.msk.f32.mxu1 %vm1730_vm0, %v1729_v0  ;;  %v1185_v0 = vpop.permute.xlu0 %1184 }
 0x431   : > { %1554 = vmatpush3.bf16.xpose.msk.msra.mxu0 %vm2024_vm5, %v1552_v26 }
 0x438   : > { %1516 = vmatmul.mubr.msk.f32.vlgmr.msra.gmra.mrb[10].mxu0 %vm665_vm4, %v1079_v27 }
 0x4ff   : > { %v847_v13 = vpop.f32.mrb[10].mxu1 }
 0x500   : > { %v1484_v14 = vpop.f32.mrb[11].mxu1 }
 0x50b   : > { %v1172_v29 = vpop.f32.mrb[10].mxu0 }
 0x50c   : > { %v1177_v23 = vrot.slane %v1172_v29, 4  ;;  %v1517_v30 = vpop.f32.mrb[11].mxu0 }
 0x50e   : > { %v1179_v31 = vsel %vm330_vm2, %v847_v13, %v1177_v23 }
 0x50f   : > { %1519 = vmatpush3.msra.mxu1 %v1179_v31 }
 0x510   : > { %1521 = vmatmul.mubr.msk.f32.vlgmr.msra.gmra.mrb[12].mxu1 %vm419_vm1, %v1180_v9 }
 0x5e3   : > { %v1256_v32 = vpop.f32.mrb[12].mxu1 }
 0x5e4   : > { %v1257_v33 = vadd.f32 %v1256_v32, %v1185_v0  ;;  %v1522_v35 = vpop.f32.mrb[13].mxu1 }
 0x5e6   : > { %1261 = vst.msk [vmem:[%s309_s20] sm:$0xff] %vm1260_vm6, %v1257_v33 }
 0x5e7   : > { %1678 = shalt.err (!%p1675_p3)
}
 0x5e8   : > { %s1679_s13 = scalar_lea.hbm %s2080_s24, 128  ;;  %s1683_s19 = scalar_lea.hbm %s2130_s8, 256 }
 0x5e9   : > { %p1680_p4 = scmp.ne.s32.totalorder %s2080_s24, %s1679_s13  ;;  %p1684_p9 = scmp.lt.u32.totalorder %s2080_s24, %s2130_s8 }
 0x5ea   : > { %p1685_p10 = scmp.lt.u32.totalorder %s1683_s19, %s1679_s13  ;;  %p1687_p12 = scmp.lt.u32.totalorder %s1679_s13, %s2080_s24 }
 0x5eb   : > { %p1681_p7 = pnand %p1680_p4, %p1818_p5 }
 0x5ec   : > { %p1686_p11 = por %p1685_p10, %p1684_p9 }
 0x5ed   : > { %p1682_p8 = pneg %p1681_p7 }
 0x5ee   : > { %p1688_p13 = por %p1687_p12, %p1686_p11 }
 0x5f0   : > { %p1689_p0 = pnand %p1688_p13, %p1682_p8 }
 0x5f2   : > { %1692 = shalt.err (!%p1689_p0)
}
 0x5f3   : > { %1555 = dma.vmem_to_hbm [thread:$0]  (%p1818_p5), %s2082_s21, 128, %s2080_s24, %s1263_s25  }
 0x5f4 PF: > { %p1561_p1 = scmp.ge.s32.totalorder %s1727_s30, 2  ;;  %s1288_s23 = sand.u32 1, %s1715_s27  }
 0x5f5   : > { %s1289_s9 = scalar_lea.sflag [#allocation3], %s1288_s23 }
 0x5f6   : > { %p1558_p2 = pnand %p1561_p1, %p1822_p6 }
 0x5f8   : > { %1710 = dma.done.wait (!%p1558_p2), %s1289_s9, 128  }
 0x5f9   : > { %1712 = vsyncadd (!%p1558_p2), %s1289_s9, 4294967168  ;;  %p18_p3 = scmp.ge.s32.totalorder %s1805_s11, 4   ;;  %s2135_s27 = smov %s1719_s28 }
 0x5fa   : > { %s2136_s28 = smov %s1723_s29  ;;  %s2137_s29 = smov %s1816_s14 }
 0x5fb   : > { %s2138_s30 = smov %s1805_s11  ;;  %20 = sbr.rel (!%p18_p3) target bundleno = 3 (0x3), region = 90 }
 0x602   :  { %1294 = vsyncpa [#allocation3], 1 }
 0x603   :  { %1296 = vsyncpa [#allocation3 + $0x1], 1 }

</bundles_post_ra>
